<compile_context>
chip_gen: v5e
topology: v5e:2x2
jax: 0.10.0
libtpu: 0.0.40
codegen_flags: <defaults>
</compile_context>

<pallas_src>
import jax
import jax.numpy as jnp
from jax.experimental import pallas as pl
from jax.experimental.pallas import tpu as pltpu

_SUBLANE = 8
_LANE = 128


def _round_up(x, m):
    return (x + m - 1) // m * m


# ----------------------------------------------------------------------------
# Fused multi-step decoder kernel.  PyTorch GRU gate order (r, z, n):
#   pre  = [x ; h] @ w_big + b_big = [r_pre | z_pre | i_n | h_n]   (one MXU pass)
#   r    = sigmoid(r_pre)            z = sigmoid(z_pre)
#   n    = tanh(i_n + r * h_n)       h' = (1 - z) * n + z * h
#   pred = h' @ w_out + b_out
# ----------------------------------------------------------------------------
def _decoder_seq_kernel(emb_ref, h0_ref, wbig_ref, bbig_ref, wout_ref, bout_ref,
                        pred_ref, hout_ref, h_scr):
    t = pl.program_id(0)
    Hp = h_scr.shape[1]

    @pl.when(t == 0)
    def _():
        h_scr[...] = h0_ref[...]

    x = emb_ref[0]                                   # (Bp, Ep)
    h = h_scr[...]                                   # (Bp, Hp)

    # Single fused gate matmul; concat boundary and gate slices are 128-lane aligned.
    xh = jnp.concatenate([x, h], axis=-1)            # (Bp, Ep + Hp)
    pre = jnp.dot(xh, wbig_ref[...], preferred_element_type=jnp.float32) + bbig_ref[...]

    r = jax.nn.sigmoid(pre[:, 0 * Hp:1 * Hp])
    z = jax.nn.sigmoid(pre[:, 1 * Hp:2 * Hp])
    n = jnp.tanh(pre[:, 2 * Hp:3 * Hp] + r * pre[:, 3 * Hp:4 * Hp])
    h_new = (1.0 - z) * n + z * h                    # (Bp, Hp); padded lanes stay 0

    h_scr[...] = h_new
    hout_ref[...] = h_new.astype(hout_ref.dtype)

    # fc_out fused in the same kernel; lane-dense (Bp, Vp) store.
    pred = jnp.dot(h_new, wout_ref[...], preferred_element_type=jnp.float32) + bout_ref[...]
    pred_ref[0] = pred.astype(pred_ref.dtype)


@jax.jit
def decoder_decode(params, input_ids_seq, hidden):
    """Teacher-forced multi-step decode in ONE fused pallas_call.

    input_ids_seq: (T, B) int32, hidden: (B, H) float32.
    Returns predictions (T, B, V) and final hidden (B, H).
    """
    T, B = input_ids_seq.shape
    H = hidden.shape[1]
    V = params["b_out"].shape[1]
    emb_p = params["embedding_pad"]
    Ep = emb_p.shape[1]
    Hp = params["w_out_pad"].shape[0]
    Vp = params["w_out_pad"].shape[1]
    Bp = _round_up(B, _SUBLANE)

    # Glue (plain JAX): pad batch, gather ALL step embeddings at once, pad hidden.
    ids_p = jnp.zeros((T, Bp), jnp.int32).at[:, :B].set(input_ids_seq)
    emb_all = jnp.take(emb_p, ids_p, axis=0)                         # (T, Bp, Ep)
    h0 = jnp.zeros((Bp, Hp), jnp.float32).at[:B, :H].set(hidden)

    pred_all, h_out = pl.pallas_call(
        _decoder_seq_kernel,
        out_shape=(jax.ShapeDtypeStruct((T, Bp, Vp), jnp.float32),
                   jax.ShapeDtypeStruct((Bp, Hp), jnp.float32)),
        grid_spec=pltpu.PrefetchScalarGridSpec(
            num_scalar_prefetch=0,
            grid=(T,),
            in_specs=[
                pl.BlockSpec((1, Bp, Ep), lambda t: (t, 0, 0)),      # per-step embeddings (pipelined)
                pl.BlockSpec((Bp, Hp), lambda t: (0, 0)),            # initial hidden (resident)
                pl.BlockSpec((Ep + Hp, 4 * Hp), lambda t: (0, 0)),   # fused GRU weights (DMA'd once)
                pl.BlockSpec((1, 4 * Hp), lambda t: (0, 0)),         # fused GRU biases
                pl.BlockSpec((Hp, Vp), lambda t: (0, 0)),            # fc_out weights (resident)
                pl.BlockSpec((1, Vp), lambda t: (0, 0)),             # fc_out bias
            ],
            out_specs=(pl.BlockSpec((1, Bp, Vp), lambda t: (t, 0, 0)),
                       pl.BlockSpec((Bp, Hp), lambda t: (0, 0))),
            scratch_shapes=[pltpu.VMEM((Bp, Hp), jnp.float32)],      # carried hidden state
        ),
        compiler_params=pltpu.CompilerParams(
            dimension_semantics=("arbitrary",)),                     # sequential hidden-state carry
    )(emb_all, h0, params["w_big"], params["b_big"],
      params["w_out_pad"], params["b_out_pad"])

    # Slice padding back off (glue).
    return pred_all[:, :B, :V], h_out[:B, :H]


@jax.jit
def decoder_forward(params, input_ids, hidden):
    """Module-equivalent single decode step: input_ids (B,) int32, hidden (B, H).

    Returns (prediction (B, V), new hidden (B, H)) — the T=1 case of the fused decode.
    """
    # TODO(synk): dropout implemented as eval-mode identity (no RNG mask applied).
    preds, h_new = decoder_decode(params, input_ids[None, :], hidden)
    return preds[0], h_new


# ----------------------------------------------------------------------------
# Parameter init (shapes match the PyTorch module; kernel tensors stored fused + lane-padded)
# ----------------------------------------------------------------------------
def init_decoder_params(key, vocab_size, emb_dim, dec_hid_dim, output_dim):
    keys = jax.random.split(key, 7)
    H, E, V = dec_hid_dim, emb_dim, output_dim

    # nn.Embedding.from_pretrained: pickle-loaded pretrained table replaced by in-script random table.
    embedding = jax.random.normal(keys[0], (vocab_size, E), jnp.float32) * 0.1

    stdv = 1.0 / (H ** 0.5)
    # PyTorch GRU weights (3H, E)/(3H, H) stored gate-stacked + transposed: (3, E, H)/(3, H, H).
    w_ih = jax.random.uniform(keys[1], (3, E, H), jnp.float32, -stdv, stdv)
    w_hh = jax.random.uniform(keys[2], (3, H, H), jnp.float32, -stdv, stdv)
    b_ih = jax.random.uniform(keys[3], (3, H), jnp.float32, -stdv, stdv)
    b_hh = jax.random.uniform(keys[4], (3, H), jnp.float32, -stdv, stdv)
    # fc_out: Linear(dec_hid_dim, output_dim), stored transposed (H, V).
    w_out = jax.random.uniform(keys[5], (H, V), jnp.float32, -stdv, stdv)
    b_out = jax.random.uniform(keys[6], (1, V), jnp.float32, -stdv, stdv)

    Ep = _round_up(E, _LANE)
    Hp = _round_up(H, _LANE)
    Vp = _round_up(V, _LANE)

    # Fused, lane-padded GRU weight block: [x ; h] @ w_big -> [r_pre | z_pre | i_n | h_n].
    w_big = jnp.zeros((Ep + Hp, 4 * Hp), jnp.float32)
    w_big = w_big.at[:E, 0 * Hp:0 * Hp + H].set(w_ih[0])
    w_big = w_big.at[:E, 1 * Hp:1 * Hp + H].set(w_ih[1])
    w_big = w_big.at[:E, 2 * Hp:2 * Hp + H].set(w_ih[2])
    w_big = w_big.at[Ep:Ep + H, 0 * Hp:0 * Hp + H].set(w_hh[0])
    w_big = w_big.at[Ep:Ep + H, 1 * Hp:1 * Hp + H].set(w_hh[1])
    w_big = w_big.at[Ep:Ep + H, 3 * Hp:3 * Hp + H].set(w_hh[2])

    # Pre-combined, padded biases: [bi_r+bh_r | bi_z+bh_z | bi_n | bh_n].
    b_big = jnp.zeros((1, 4 * Hp), jnp.float32)
    b_big = b_big.at[0, 0 * Hp:0 * Hp + H].set(b_ih[0] + b_hh[0])
    b_big = b_big.at[0, 1 * Hp:1 * Hp + H].set(b_ih[1] + b_hh[1])
    b_big = b_big.at[0, 2 * Hp:2 * Hp + H].set(b_ih[2])
    b_big = b_big.at[0, 3 * Hp:3 * Hp + H].set(b_hh[2])

    w_out_pad = jnp.zeros((Hp, Vp), jnp.float32).at[:H, :V].set(w_out)
    b_out_pad = jnp.zeros((1, Vp), jnp.float32).at[:, :V].set(b_out)
    embedding_pad = jnp.zeros((vocab_size, Ep), jnp.float32).at[:, :E].set(embedding)

    return {
        # fused / padded tensors used by the kernel
        "embedding_pad": embedding_pad, "w_big": w_big, "b_big": b_big,
        "w_out_pad": w_out_pad, "b_out_pad": b_out_pad,
        # unpadded originals (pure-JAX reference check only)
        "embedding": embedding, "w_ih": w_ih, "w_hh": w_hh,
        "b_ih": b_ih, "b_hh": b_hh, "w_out": w_out, "b_out": b_out,
    }


# ----------------------------------------------------------------------------
# Pure-JAX reference (correctness check only)
# ----------------------------------------------------------------------------
def _gru_step_ref(params, x, h):
    w_ih, w_hh, b_ih, b_hh = params["w_ih"], params["w_hh"], params["b_ih"], params["b_hh"]
    r = jax.nn.sigmoid(x @ w_ih[0] + b_ih[0] + h @ w_hh[0] + b_hh[0])
    z = jax.nn.sigmoid(x @ w_ih[1] + b_ih[1] + h @ w_hh[1] + b_hh[1])
    n = jnp.tanh(x @ w_ih[2] + b_ih[2] + r * (h @ w_hh[2] + b_hh[2]))
    return (1.0 - z) * n + z * h


def _decoder_decode_ref(params, ids_seq, hidden):
    preds, h = [], hidden
    for t in range(ids_seq.shape[0]):
        x = jnp.take(params["embedding"], ids_seq[t], axis=0)
        h = _gru_step_ref(params, x, h)
        preds.append(h @ params["w_out"] + params["b_out"])
    return jnp.stack(preds, axis=0), h


if __name__ == "__main__":
    OUTPUT_DIM = 50      # == vocab size (fc_out projects to the vocabulary)
    EMB_DIM = 32
    DEC_HID = 32
    B = 2
    T = 8                # teacher-forced decode length for the fused-loop demo

    key = jax.random.PRNGKey(0)
    pkey, ikey, skey, hkey = jax.random.split(key, 4)
    params = init_decoder_params(pkey, OUTPUT_DIM, EMB_DIM, DEC_HID, OUTPUT_DIM)
    input_ids = jax.random.randint(ikey, (B,), 0, OUTPUT_DIM, dtype=jnp.int32)
    ids_seq = jax.random.randint(skey, (T, B), 0, OUTPUT_DIM, dtype=jnp.int32)
    hidden = jax.random.normal(hkey, (B, DEC_HID), jnp.float32) * 0.1

    # 1) Module-equivalent single step (T = 1).
    prediction, hidden_new = decoder_forward(params, input_ids, hidden)
    jax.block_until_ready((prediction, hidden_new))
    assert prediction.shape == (B, OUTPUT_DIM), prediction.shape
    assert hidden_new.shape == (B, DEC_HID), hidden_new.shape
    assert bool(jnp.all(jnp.isfinite(prediction))) and bool(jnp.all(jnp.isfinite(hidden_new)))

    pred_ref_1, hid_ref_1 = _decoder_decode_ref(params, input_ids[None, :], hidden)
    assert bool(jnp.allclose(prediction, pred_ref_1[0], atol=1e-4, rtol=1e-4))
    assert bool(jnp.allclose(hidden_new, hid_ref_1, atol=1e-4, rtol=1e-4))

    # 2) Multi-step teacher-forced decode (one pallas_call amortized over T steps).
    preds_seq, hidden_T = decoder_decode(params, ids_seq, hidden)
    jax.block_until_ready((preds_seq, hidden_T))
    assert preds_seq.shape == (T, B, OUTPUT_DIM), preds_seq.shape
    assert hidden_T.shape == (B, DEC_HID), hidden_T.shape

    preds_ref, hid_T_ref = _decoder_decode_ref(params, ids_seq, hidden)
    assert bool(jnp.allclose(preds_seq, preds_ref, atol=1e-4, rtol=1e-4))
    assert bool(jnp.allclose(hidden_T, hid_T_ref, atol=1e-4, rtol=1e-4))

    print("KERNEL_OK")
</pallas_src>

<mosaic_0001>
module attributes {stable_mosaic.version = 11 : i64} {
  func.func @_decoder_seq_kernel(%arg0: i32, %arg1: memref<1x8x128xf32, #tpu.memory_space<vmem>>, %arg2: memref<8x128xf32, #tpu.memory_space<vmem>>, %arg3: memref<256x512xf32, #tpu.memory_space<vmem>>, %arg4: memref<1x512xf32, #tpu.memory_space<vmem>>, %arg5: memref<128x128xf32, #tpu.memory_space<vmem>>, %arg6: memref<1x128xf32, #tpu.memory_space<vmem>>, %arg7: memref<1x8x128xf32, #tpu.memory_space<vmem>>, %arg8: memref<8x128xf32, #tpu.memory_space<vmem>>, %arg9: memref<8x128xf32, #tpu.memory_space<vmem>>) attributes {dimension_semantics = [#tpu.dimension_semantics<arbitrary>], iteration_bounds = array<i64: 1>, scalar_prefetch = 0 : i64, scratch_operands = 1 : i64, tpu.core_type = #tpu.core_type<tc>, window_params = [{transform_indices = @transform_0, window_bounds = array<i64: 1, 8, 128>}, {pipeline_mode = #tpu.pipeline_mode<synchronous>, transform_indices = @transform_1, window_bounds = array<i64: 8, 128>}, {pipeline_mode = #tpu.pipeline_mode<synchronous>, transform_indices = @transform_2, window_bounds = array<i64: 256, 512>}, {pipeline_mode = #tpu.pipeline_mode<synchronous>, transform_indices = @transform_3, window_bounds = array<i64: 1, 512>}, {pipeline_mode = #tpu.pipeline_mode<synchronous>, transform_indices = @transform_4, window_bounds = array<i64: 128, 128>}, {pipeline_mode = #tpu.pipeline_mode<synchronous>, transform_indices = @transform_5, window_bounds = array<i64: 1, 128>}, {transform_indices = @transform_6, window_bounds = array<i64: 1, 8, 128>}, {pipeline_mode = #tpu.pipeline_mode<synchronous>, transform_indices = @transform_7, window_bounds = array<i64: 8, 128>}]} {
    %c0_i32 = arith.constant 0 : i32
    %0 = arith.cmpi eq, %arg0, %c0_i32 : i32
    %1 = arith.extui %0 : i1 to i32
    %c0_i32_0 = arith.constant 0 : i32
    %2 = arith.cmpi ne, %1, %c0_i32_0 : i32
    scf.if %2 {
      %c0_24 = arith.constant 0 : index
      %c0_25 = arith.constant 0 : index
      %44 = vector.load %arg2[%c0_24, %c0_25] : memref<8x128xf32, #tpu.memory_space<vmem>>, vector<8x128xf32>
      %c0_26 = arith.constant 0 : index
      %c0_27 = arith.constant 0 : index
      %45 = vector.load %arg9[%c0_26, %c0_27] : memref<8x128xf32, #tpu.memory_space<vmem>>, vector<8x128xf32>
      tpu.vector_store %arg9[%c0_26, %c0_27], %44 {strides = array<i32>} : memref<8x128xf32, #tpu.memory_space<vmem>>, vector<8x128xf32>,
    } else {
    }
    %c0 = arith.constant 0 : index
    %c0_1 = arith.constant 0 : index
    %c0_2 = arith.constant 0 : index
    %3 = vector.load %arg1[%c0, %c0_1, %c0_2] : memref<1x8x128xf32, #tpu.memory_space<vmem>>, vector<1x8x128xf32>
    %4 = vector.shape_cast %3 : vector<1x8x128xf32> to vector<8x128xf32>
    %c0_3 = arith.constant 0 : index
    %c0_4 = arith.constant 0 : index
    %5 = vector.load %arg9[%c0_3, %c0_4] : memref<8x128xf32, #tpu.memory_space<vmem>>, vector<8x128xf32>
    %6 = tpu.concatenate %4, %5 in 1 : vector<8x128xf32>, vector<8x128xf32> -> vector<8x256xf32>
    %c0_5 = arith.constant 0 : index
    %c0_6 = arith.constant 0 : index
    %7 = vector.load %arg3[%c0_5, %c0_6] : memref<256x512xf32, #tpu.memory_space<vmem>>, vector<256x512xf32>
    %cst = arith.constant dense<0.000000e+00> : vector<8x512xf32>
    %8 = tpu.matmul %6, %7, %cst {dimension_numbers = #tpu.dot_dimension_numbers<[1], [0], [0], [1], [0, 0, 1, 1], [], []>} : vector<8x256xf32>, vector<256x512xf32>, vector<8x512xf32> -> vector<8x512xf32>
    %c0_7 = arith.constant 0 : index
    %c0_8 = arith.constant 0 : index
    %9 = vector.load %arg4[%c0_7, %c0_8] : memref<1x512xf32, #tpu.memory_space<vmem>>, vector<1x512xf32>
    %10 = vector.broadcast %9 : vector<1x512xf32> to vector<8x512xf32>
    %11 = arith.addf %8, %10 : vector<8x512xf32>
    %12 = vector.extract_strided_slice %11 {offsets = [0, 0], sizes = [8, 128], strides = [1, 1]} : vector<8x512xf32> to vector<8x128xf32>
    %13 = arith.negf %12 : vector<8x128xf32>
    %14 = math.exp %13 : vector<8x128xf32>
    %cst_9 = arith.constant 1.000000e+00 : f32
    %15 = vector.broadcast %cst_9 : f32 to vector<8x128xf32>
    %16 = arith.addf %15, %14 : vector<8x128xf32>
    %17 = arith.divf %15, %16 : vector<8x128xf32>
    %18 = vector.extract_strided_slice %11 {offsets = [0, 128], sizes = [8, 128], strides = [1, 1]} : vector<8x512xf32> to vector<8x128xf32>
    %19 = arith.negf %18 : vector<8x128xf32>
    %20 = math.exp %19 : vector<8x128xf32>
    %cst_10 = arith.constant 1.000000e+00 : f32
    %21 = vector.broadcast %cst_10 : f32 to vector<8x128xf32>
    %22 = arith.addf %21, %20 : vector<8x128xf32>
    %23 = arith.divf %21, %22 : vector<8x128xf32>
    %24 = vector.extract_strided_slice %11 {offsets = [0, 256], sizes = [8, 128], strides = [1, 1]} : vector<8x512xf32> to vector<8x128xf32>
    %25 = vector.extract_strided_slice %11 {offsets = [0, 384], sizes = [8, 128], strides = [1, 1]} : vector<8x512xf32> to vector<8x128xf32>
    %26 = arith.mulf %17, %25 : vector<8x128xf32>
    %27 = arith.addf %24, %26 : vector<8x128xf32>
    %28 = math.tanh %27 : vector<8x128xf32>
    %cst_11 = arith.constant 1.000000e+00 : f32
    %29 = vector.broadcast %cst_11 : f32 to vector<8x128xf32>
    %30 = arith.subf %29, %23 : vector<8x128xf32>
    %31 = arith.mulf %30, %28 : vector<8x128xf32>
    %32 = arith.mulf %23, %5 : vector<8x128xf32>
    %33 = arith.addf %31, %32 : vector<8x128xf32>
    %c0_12 = arith.constant 0 : index
    %c0_13 = arith.constant 0 : index
    %34 = vector.load %arg9[%c0_12, %c0_13] : memref<8x128xf32, #tpu.memory_space<vmem>>, vector<8x128xf32>
    tpu.vector_store %arg9[%c0_12, %c0_13], %33 {strides = array<i32>} : memref<8x128xf32, #tpu.memory_space<vmem>>, vector<8x128xf32>,
    %c0_14 = arith.constant 0 : index
    %c0_15 = arith.constant 0 : index
    %35 = vector.load %arg8[%c0_14, %c0_15] : memref<8x128xf32, #tpu.memory_space<vmem>>, vector<8x128xf32>
    tpu.vector_store %arg8[%c0_14, %c0_15], %33 {strides = array<i32>} : memref<8x128xf32, #tpu.memory_space<vmem>>, vector<8x128xf32>,
    %c0_16 = arith.constant 0 : index
    %c0_17 = arith.constant 0 : index
    %36 = vector.load %arg5[%c0_16, %c0_17] : memref<128x128xf32, #tpu.memory_space<vmem>>, vector<128x128xf32>
    %cst_18 = arith.constant dense<0.000000e+00> : vector<8x128xf32>
    %37 = tpu.matmul %33, %36, %cst_18 {dimension_numbers = #tpu.dot_dimension_numbers<[1], [0], [0], [1], [0, 0, 1, 1], [], []>} : vector<8x128xf32>, vector<128x128xf32>, vector<8x128xf32> -> vector<8x128xf32>
    %c0_19 = arith.constant 0 : index
    %c0_20 = arith.constant 0 : index
    %38 = vector.load %arg6[%c0_19, %c0_20] : memref<1x128xf32, #tpu.memory_space<vmem>>, vector<1x128xf32>
    %39 = vector.broadcast %38 : vector<1x128xf32> to vector<8x128xf32>
    %40 = arith.addf %37, %39 : vector<8x128xf32>
    %c0_21 = arith.constant 0 : index
    %c0_22 = arith.constant 0 : index
    %c0_23 = arith.constant 0 : index
    %41 = vector.load %arg7[%c0_21, %c0_22, %c0_23] : memref<1x8x128xf32, #tpu.memory_space<vmem>>, vector<1x8x128xf32>
    %42 = vector.shape_cast %41 : vector<1x8x128xf32> to vector<8x128xf32>
    %43 = vector.shape_cast %40 : vector<8x128xf32> to vector<1x8x128xf32>
    tpu.vector_store %arg7[%c0_21, %c0_22, %c0_23], %43 {strides = array<i32>} : memref<1x8x128xf32, #tpu.memory_space<vmem>>, vector<1x8x128xf32>,
    return
  }
  func.func @transform_0(%arg0: i32) -> (i32, i32, i32) {
    %c0_i32 = arith.constant 0 : i32
    %c0_i32_0 = arith.constant 0 : i32
    %c0_i32_1 = arith.constant 0 : i32
    return %arg0, %c0_i32, %c0_i32_0 : i32, i32, i32
  }
  func.func @transform_1(%arg0: i32) -> (i32, i32) {
    %c0_i32 = arith.constant 0 : i32
    %c0_i32_0 = arith.constant 0 : i32
    %c0_i32_1 = arith.constant 0 : i32
    return %c0_i32, %c0_i32_0 : i32, i32
  }
  func.func @transform_2(%arg0: i32) -> (i32, i32) {
    %c0_i32 = arith.constant 0 : i32
    %c0_i32_0 = arith.constant 0 : i32
    %c0_i32_1 = arith.constant 0 : i32
    return %c0_i32, %c0_i32_0 : i32, i32
  }
  func.func @transform_3(%arg0: i32) -> (i32, i32) {
    %c0_i32 = arith.constant 0 : i32
    %c0_i32_0 = arith.constant 0 : i32
    %c0_i32_1 = arith.constant 0 : i32
    return %c0_i32, %c0_i32_0 : i32, i32
  }
  func.func @transform_4(%arg0: i32) -> (i32, i32) {
    %c0_i32 = arith.constant 0 : i32
    %c0_i32_0 = arith.constant 0 : i32
    %c0_i32_1 = arith.constant 0 : i32
    return %c0_i32, %c0_i32_0 : i32, i32
  }
  func.func @transform_5(%arg0: i32) -> (i32, i32) {
    %c0_i32 = arith.constant 0 : i32
    %c0_i32_0 = arith.constant 0 : i32
    %c0_i32_1 = arith.constant 0 : i32
    return %c0_i32, %c0_i32_0 : i32, i32
  }
  func.func @transform_6(%arg0: i32) -> (i32, i32, i32) {
    %c0_i32 = arith.constant 0 : i32
    %c0_i32_0 = arith.constant 0 : i32
    %c0_i32_1 = arith.constant 0 : i32
    return %arg0, %c0_i32, %c0_i32_0 : i32, i32, i32
  }
  func.func @transform_7(%arg0: i32) -> (i32, i32) {
    %c0_i32 = arith.constant 0 : i32
    %c0_i32_0 = arith.constant 0 : i32
    %c0_i32_1 = arith.constant 0 : i32
    return %c0_i32, %c0_i32_0 : i32, i32
  }
}

</mosaic_0001>

<bundles_post_ra>
// kernel: decoder_decode.1
= control target key start
LH: loop header
LB: loop body
LE: loop exit
PB: predicated region body
PF: predicated region fallthrough
CT: control target
= control target key end

     0   :  { %13 = vsyncpa [#allocation4], 0  ;;  %s621_s0 = inlined_call_operand.vmem [shape: f32[1,8,128], index: 0, kind: input, shape index: {}]   ;;  %s622_s1 = inlined_call_operand.vmem [shape: f32[8,128], index: 1, kind: input, shape index: {}]   ;;  %s623_s2 = inlined_call_operand.hbm [shape: f32[256,512], index: 2, kind: input, shape index: {}]   ;;  %s624_s3 = inlined_call_operand.vmem [shape: f32[1,512], index: 3, kind: input, shape index: {}]   ;;  %s625_s4 = inlined_call_operand.hbm [shape: f32[128,128], index: 4, kind: input, shape index: {}]   ;;  %s626_s5 = inlined_call_operand.vmem [shape: f32[1,128], index: 5, kind: input, shape index: {}]   ;;  %s627_s6 = inlined_call_operand.vmem [shape: f32[1,8,128], index: 6, kind: output, shape index: {0}]   ;;  %s628_s7 = inlined_call_operand.vmem [shape: f32[8,128], index: 7, kind: output, shape index: {1}]  }
   0x1   :  { %s23_s26 = sshll.u32 %s623_s2, 4  ;;  %s24_s26 = int_to_ptr.hbm [resolvable:$true] %s23_s26 }
   0x2   :  { %14 = vsyncpa [#allocation6], 0  ;;  %s532_s27 = smov [#allocation3]   ;;  %s38_s8 = sshll.u32 %s625_s4, 4  ;;  %s39_s8 = int_to_ptr.hbm [resolvable:$true] %s38_s8 }
   0x3   :  { %s25_s28 = sshll.u32 %s532_s27, 4  ;;  %s533_s9 = smov 512   ;;  %s26_s28 = int_to_ptr.vmem [resolvable:$true] %s25_s28 }
   0x4   :  { %s534_s10 = smov 32   ;;  %s535_s11 = smov [#allocation5]  }
   0x5   :  { %31 = dma.hbm_to_vmem [thread:$0]  %s24_s26, 16384, %s26_s28, [#allocation4], %s533_s9, %s533_s9, %s534_s10  }
   0x6   :  { %s40_s12 = sshll.u32 %s535_s11, 4  ;;  %s536_s13 = smov 128   ;;  %s41_s12 = int_to_ptr.vmem [resolvable:$true] %s40_s12 }
   0x7   :  { %s537_s14 = smov 8  }
   0x8   :  { %46 = dma.hbm_to_vmem [thread:$0]  %s39_s8, 2048, %s41_s12, [#allocation6], %s536_s13, %s536_s13, %s537_s14  }
   0x9   :  { %528 = dma.done.wait [#allocation4], 16384  }
   0xa   :  { %529 = vsyncadd [#allocation4], 4294950912 }
   0xb   :  { %530 = dma.done.wait [#allocation6], 2048  }
   0xc   :  { %531 = vsyncadd [#allocation6], 4294965248  ;;  %v125_v0 = vld [vmem:[#allocation3 + $0x1e0] sm:$0xff]  ;;  %v126_v1 = vld [vmem:[#allocation3 + $0x1e8] sm:$0xff] }
   0xd   :  { %v121_v2 = vld [vmem:[#allocation3 + $0x1c0] sm:$0xff]  ;;  %203 = vmatpush.msra.mxu0 %v125_v0  ;;  %243 = vmatpush.msra.mxu2 %v126_v1  ;;  %v122_v4 = vld [vmem:[#allocation3 + $0x1c8] sm:$0xff]  ;;  %v128_v63 = vld [vmem:[#allocation3 + $0x1f8] sm:$0xff] }
   0xe   :  { %v189_v3 = vld [vmem:[#allocation3 + $0x3e0] sm:$0xff]  ;;  %v190_v5 = vld [vmem:[#allocation3 + $0x3e8] sm:$0xff] }
   0xf   :  { %223 = vmatpush.msra.mxu1 %v189_v3  ;;  %263 = vmatpush.msra.mxu3 %v190_v5  ;;  %v117_v6 = vld [vmem:[#allocation3 + $0x1a0] sm:$0xff]  ;;  %v118_v8 = vld [vmem:[#allocation3 + $0x1a8] sm:$0xff]  ;;  %v124_v3 = vld [vmem:[#allocation3 + $0x1d8] sm:$0xff] }
  0x10   :  { %v185_v7 = vld [vmem:[#allocation3 + $0x3c0] sm:$0xff]  ;;  %204 = vmatpush.msra.mxu0 %v121_v2  ;;  %244 = vmatpush.msra.mxu2 %v122_v4  ;;  %v186_v9 = vld [vmem:[#allocation3 + $0x3c8] sm:$0xff]  ;;  %v192_v4 = vld [vmem:[#allocation3 + $0x3f8] sm:$0xff] }
  0x11   :  { %v181_v10 = vld [vmem:[#allocation3 + $0x3a0] sm:$0xff]  ;;  %224 = vmatpush.msra.mxu1 %v185_v7  ;;  %264 = vmatpush.msra.mxu3 %v186_v9  ;;  %v114_v12 = vld [vmem:[#allocation3 + $0x188] sm:$0xff]  ;;  %v127_v5 = vld [vmem:[#allocation3 + $0x1f0] sm:$0xff] }
  0x12   :  { %v113_v11 = vld [vmem:[#allocation3 + $0x180] sm:$0xff]  ;;  %v182_v13 = vld [vmem:[#allocation3 + $0x3a8] sm:$0xff]  ;;  %205 = vmatpush.msra.mxu0 %v117_v6  ;;  %245 = vmatpush.msra.mxu2 %v118_v8  ;;  %v120_v6 = vld [vmem:[#allocation3 + $0x1b8] sm:$0xff] }
  0x13   :  { %v177_v14 = vld [vmem:[#allocation3 + $0x380] sm:$0xff]  ;;  %v178_v15 = vld [vmem:[#allocation3 + $0x388] sm:$0xff]  ;;  %225 = vmatpush.msra.mxu1 %v181_v10  ;;  %265 = vmatpush.msra.mxu3 %v182_v13  ;;  %v191_v7 = vld [vmem:[#allocation3 + $0x3f0] sm:$0xff] }
  0x14   :  { %v109_v16 = vld [vmem:[#allocation3 + $0x160] sm:$0xff]  ;;  %v110_v17 = vld [vmem:[#allocation3 + $0x168] sm:$0xff]  ;;  %206 = vmatpush.msra.mxu0 %v113_v11  ;;  %246 = vmatpush.msra.mxu2 %v114_v12  ;;  %v188_v8 = vld [vmem:[#allocation3 + $0x3d8] sm:$0xff] }
  0x15   :  { %v173_v18 = vld [vmem:[#allocation3 + $0x360] sm:$0xff]  ;;  %v174_v19 = vld [vmem:[#allocation3 + $0x368] sm:$0xff]  ;;  %226 = vmatpush.msra.mxu1 %v177_v14  ;;  %266 = vmatpush.msra.mxu3 %v178_v15  ;;  %v123_v9 = vld [vmem:[#allocation3 + $0x1d0] sm:$0xff] }
  0x16   :  { %v105_v20 = vld [vmem:[#allocation3 + $0x140] sm:$0xff]  ;;  %v106_v21 = vld [vmem:[#allocation3 + $0x148] sm:$0xff]  ;;  %207 = vmatpush.msra.mxu0 %v109_v16  ;;  %247 = vmatpush.msra.mxu2 %v110_v17  ;;  %v116_v10 = vld [vmem:[#allocation3 + $0x198] sm:$0xff] }
  0x17   :  { %v169_v22 = vld [vmem:[#allocation3 + $0x340] sm:$0xff]  ;;  %v170_v23 = vld [vmem:[#allocation3 + $0x348] sm:$0xff]  ;;  %227 = vmatpush.msra.mxu1 %v173_v18  ;;  %267 = vmatpush.msra.mxu3 %v174_v19  ;;  %v187_v11 = vld [vmem:[#allocation3 + $0x3d0] sm:$0xff] }
  0x18   :  { %v101_v24 = vld [vmem:[#allocation3 + $0x120] sm:$0xff]  ;;  %v102_v25 = vld [vmem:[#allocation3 + $0x128] sm:$0xff]  ;;  %208 = vmatpush.msra.mxu0 %v105_v20  ;;  %248 = vmatpush.msra.mxu2 %v106_v21  ;;  %v184_v12 = vld [vmem:[#allocation3 + $0x3b8] sm:$0xff] }
  0x19   :  { %v165_v26 = vld [vmem:[#allocation3 + $0x320] sm:$0xff]  ;;  %v166_v27 = vld [vmem:[#allocation3 + $0x328] sm:$0xff]  ;;  %228 = vmatpush.msra.mxu1 %v169_v22  ;;  %268 = vmatpush.msra.mxu3 %v170_v23  ;;  %v119_v13 = vld [vmem:[#allocation3 + $0x1b0] sm:$0xff] }
  0x1a   :  { %v97_v28 = vld [vmem:[#allocation3 + $0x100] sm:$0xff]  ;;  %v98_v29 = vld [vmem:[#allocation3 + $0x108] sm:$0xff]  ;;  %209 = vmatpush.msra.mxu0 %v101_v24  ;;  %249 = vmatpush.msra.mxu2 %v102_v25  ;;  %v112_v14 = vld [vmem:[#allocation3 + $0x178] sm:$0xff] }
  0x1b   :  { %v161_v30 = vld [vmem:[#allocation3 + $0x300] sm:$0xff]  ;;  %v162_v31 = vld [vmem:[#allocation3 + $0x308] sm:$0xff]  ;;  %229 = vmatpush.msra.mxu1 %v165_v26  ;;  %269 = vmatpush.msra.mxu3 %v166_v27  ;;  %v183_v15 = vld [vmem:[#allocation3 + $0x3b0] sm:$0xff] }
  0x1c   :  { %v93_v32 = vld [vmem:[#allocation3 + $0xe0] sm:$0xff]  ;;  %v94_v33 = vld [vmem:[#allocation3 + $0xe8] sm:$0xff]  ;;  %210 = vmatpush.msra.mxu0 %v97_v28  ;;  %250 = vmatpush.msra.mxu2 %v98_v29  ;;  %v180_v16 = vld [vmem:[#allocation3 + $0x398] sm:$0xff] }
  0x1d   :  { %v157_v34 = vld [vmem:[#allocation3 + $0x2e0] sm:$0xff]  ;;  %v158_v35 = vld [vmem:[#allocation3 + $0x2e8] sm:$0xff]  ;;  %230 = vmatpush.msra.mxu1 %v161_v30  ;;  %270 = vmatpush.msra.mxu3 %v162_v31  ;;  %v115_v17 = vld [vmem:[#allocation3 + $0x190] sm:$0xff] }
  0x1e   :  { %v89_v36 = vld [vmem:[#allocation3 + $0xc0] sm:$0xff]  ;;  %v90_v37 = vld [vmem:[#allocation3 + $0xc8] sm:$0xff]  ;;  %211 = vmatpush.msra.mxu0 %v93_v32  ;;  %251 = vmatpush.msra.mxu2 %v94_v33  ;;  %v108_v18 = vld [vmem:[#allocation3 + $0x158] sm:$0xff] }
  0x1f   :  { %v153_v38 = vld [vmem:[#allocation3 + $0x2c0] sm:$0xff]  ;;  %v154_v39 = vld [vmem:[#allocation3 + $0x2c8] sm:$0xff]  ;;  %231 = vmatpush.msra.mxu1 %v157_v34  ;;  %271 = vmatpush.msra.mxu3 %v158_v35  ;;  %v179_v19 = vld [vmem:[#allocation3 + $0x390] sm:$0xff] }
  0x20   :  { %v85_v40 = vld [vmem:[#allocation3 + $0xa0] sm:$0xff]  ;;  %v86_v41 = vld [vmem:[#allocation3 + $0xa8] sm:$0xff]  ;;  %212 = vmatpush.msra.mxu0 %v89_v36  ;;  %252 = vmatpush.msra.mxu2 %v90_v37  ;;  %v176_v20 = vld [vmem:[#allocation3 + $0x378] sm:$0xff] }
  0x21   :  { %v149_v42 = vld [vmem:[#allocation3 + $0x2a0] sm:$0xff]  ;;  %v150_v43 = vld [vmem:[#allocation3 + $0x2a8] sm:$0xff]  ;;  %232 = vmatpush.msra.mxu1 %v153_v38  ;;  %272 = vmatpush.msra.mxu3 %v154_v39  ;;  %v111_v21 = vld [vmem:[#allocation3 + $0x170] sm:$0xff] }
  0x22   :  { %v81_v44 = vld [vmem:[#allocation3 + $0x80] sm:$0xff]  ;;  %v82_v45 = vld [vmem:[#allocation3 + $0x88] sm:$0xff]  ;;  %213 = vmatpush.msra.mxu0 %v85_v40  ;;  %253 = vmatpush.msra.mxu2 %v86_v41  ;;  %v104_v22 = vld [vmem:[#allocation3 + $0x138] sm:$0xff] }
  0x23   :  { %v145_v46 = vld [vmem:[#allocation3 + $0x280] sm:$0xff]  ;;  %v146_v47 = vld [vmem:[#allocation3 + $0x288] sm:$0xff]  ;;  %233 = vmatpush.msra.mxu1 %v149_v42  ;;  %273 = vmatpush.msra.mxu3 %v150_v43  ;;  %v175_v23 = vld [vmem:[#allocation3 + $0x370] sm:$0xff] }
  0x24   :  { %v77_v48 = vld [vmem:[#allocation3 + $0x60] sm:$0xff]  ;;  %v78_v49 = vld [vmem:[#allocation3 + $0x68] sm:$0xff]  ;;  %214 = vmatpush.msra.mxu0 %v81_v44  ;;  %254 = vmatpush.msra.mxu2 %v82_v45  ;;  %v172_v24 = vld [vmem:[#allocation3 + $0x358] sm:$0xff] }
  0x25   :  { %v141_v50 = vld [vmem:[#allocation3 + $0x260] sm:$0xff]  ;;  %v142_v51 = vld [vmem:[#allocation3 + $0x268] sm:$0xff]  ;;  %234 = vmatpush.msra.mxu1 %v145_v46  ;;  %274 = vmatpush.msra.mxu3 %v146_v47  ;;  %v107_v25 = vld [vmem:[#allocation3 + $0x150] sm:$0xff] }
  0x26   :  { %v73_v52 = vld [vmem:[#allocation3 + $0x40] sm:$0xff]  ;;  %v74_v53 = vld [vmem:[#allocation3 + $0x48] sm:$0xff]  ;;  %215 = vmatpush.msra.mxu0 %v77_v48  ;;  %255 = vmatpush.msra.mxu2 %v78_v49  ;;  %v100_v26 = vld [vmem:[#allocation3 + $0x118] sm:$0xff] }
  0x27   :  { %v137_v54 = vld [vmem:[#allocation3 + $0x240] sm:$0xff]  ;;  %v138_v55 = vld [vmem:[#allocation3 + $0x248] sm:$0xff]  ;;  %235 = vmatpush.msra.mxu1 %v141_v50  ;;  %275 = vmatpush.msra.mxu3 %v142_v51  ;;  %v171_v27 = vld [vmem:[#allocation3 + $0x350] sm:$0xff] }
  0x28   :  { %v69_v56 = vld [vmem:[#allocation3 + $0x20] sm:$0xff]  ;;  %v70_v57 = vld [vmem:[#allocation3 + $0x28] sm:$0xff]  ;;  %216 = vmatpush.msra.mxu0 %v73_v52  ;;  %256 = vmatpush.msra.mxu2 %v74_v53  ;;  %v168_v28 = vld [vmem:[#allocation3 + $0x338] sm:$0xff] }
  0x29   :  { %v133_v58 = vld [vmem:[#allocation3 + $0x220] sm:$0xff]  ;;  %v134_v59 = vld [vmem:[#allocation3 + $0x228] sm:$0xff]  ;;  %236 = vmatpush.msra.mxu1 %v137_v54  ;;  %276 = vmatpush.msra.mxu3 %v138_v55  ;;  %v103_v29 = vld [vmem:[#allocation3 + $0x130] sm:$0xff] }
  0x2a   :  { %v65_v60 = vld [vmem:[#allocation3] sm:$0xff]  ;;  %v66_v61 = vld [vmem:[#allocation3 + $0x8] sm:$0xff]  ;;  %217 = vmatpush.msra.mxu0 %v69_v56  ;;  %257 = vmatpush.msra.mxu2 %v70_v57  ;;  %v96_v30 = vld [vmem:[#allocation3 + $0xf8] sm:$0xff] }
  0x2b   :  { %v587_v62 = vld [vmem:[%s621_s0] sm:$0xff]  ;;  %237 = vmatpush.msra.mxu1 %v133_v58  ;;  %277 = vmatpush.msra.mxu3 %v134_v59  ;;  %v130_v1 = vld [vmem:[#allocation3 + $0x208] sm:$0xff]  ;;  %v167_v31 = vld [vmem:[#allocation3 + $0x330] sm:$0xff] }
  0x2c   :  { %v129_v0 = vld [vmem:[#allocation3 + $0x200] sm:$0xff]  ;;  %218 = vmatpush.msra.mxu0 %v65_v60  ;;  %258 = vmatpush.msra.mxu2 %v66_v61  ;;  %v164_v32 = vld [vmem:[#allocation3 + $0x318] sm:$0xff]  ;;  %v99_v33 = vld [vmem:[#allocation3 + $0x110] sm:$0xff] }
  0x2d   :  { %v592_v2 = vld [vmem:[%s622_s1] sm:$0xff]  ;;  %219 = vmatmul.f32.vlgmr.msra.gmra.mxu0 %v587_v62  ;;  %259 = vmatmul.f32.vlgmr.msra.gmra.mxu2 %v587_v62  ;;  %v92_v34 = vld [vmem:[#allocation3 + $0xd8] sm:$0xff]  ;;  %v163_v35 = vld [vmem:[#allocation3 + $0x310] sm:$0xff] }
  0x2e   :  { %323 = vmatpush.msrb.mxu2 %v128_v63  ;;  %238 = vmatpush.msra.mxu1 %v129_v0  ;;  %v160_v36 = vld [vmem:[#allocation3 + $0x2f8] sm:$0xff]  ;;  %v95_v37 = vld [vmem:[#allocation3 + $0xf0] sm:$0xff] }
  0x2f   :  { %278 = vmatpush.msra.mxu3 %v130_v1  ;;  %239 = vmatmul.f32.vlgmr.msra.gmra.mxu1 %v592_v2  ;;  %v88_v38 = vld [vmem:[#allocation3 + $0xb8] sm:$0xff]  ;;  %v159_v39 = vld [vmem:[#allocation3 + $0x2f0] sm:$0xff] }
  0x30   :  { %279 = vmatmul.f32.vlgmr.msra.gmra.mxu3 %v592_v2  ;;  %324 = vmatpush.msrb.mxu2 %v124_v3  ;;  %v156_v40 = vld [vmem:[#allocation3 + $0x2d8] sm:$0xff]  ;;  %v91_v41 = vld [vmem:[#allocation3 + $0xd0] sm:$0xff] }
  0x31   :  { %343 = vmatpush.msrb.mxu3 %v192_v4  ;;  %283 = vmatpush.msrb.mxu0 %v127_v5  ;;  %v84_v42 = vld [vmem:[#allocation3 + $0x98] sm:$0xff]  ;;  %v155_v43 = vld [vmem:[#allocation3 + $0x2d0] sm:$0xff]  ;;  %v605_v4 = vld [vmem:[%s624_s3] sm:$0xf] }
  0x32   :  { %325 = vmatpush.msrb.mxu2 %v120_v6  ;;  %303 = vmatpush.msrb.mxu1 %v191_v7  ;;  %v152_v44 = vld [vmem:[#allocation3 + $0x2b8] sm:$0xff]  ;;  %v87_v45 = vld [vmem:[#allocation3 + $0xb0] sm:$0xff]  ;;  %v195_v6 = vperm.slane %v605_v4, 0 }
  0x33   :  { %344 = vmatpush.msrb.mxu3 %v188_v8  ;;  %284 = vmatpush.msrb.mxu0 %v123_v9  ;;  %v80_v46 = vld [vmem:[#allocation3 + $0x78] sm:$0xff]  ;;  %v151_v47 = vld [vmem:[#allocation3 + $0x2b0] sm:$0xff]  ;;  %v423_v8 = vld [vmem:[#allocation5 + $0x68] sm:$0xff] }
  0x34   :  { %326 = vmatpush.msrb.mxu2 %v116_v10  ;;  %304 = vmatpush.msrb.mxu1 %v187_v11  ;;  %v148_v48 = vld [vmem:[#allocation3 + $0x298] sm:$0xff]  ;;  %v83_v49 = vld [vmem:[#allocation3 + $0x90] sm:$0xff]  ;;  %v422_v11 = vld [vmem:[#allocation5 + $0x60] sm:$0xff] }
  0x35   :  { %345 = vmatpush.msrb.mxu3 %v184_v12  ;;  %285 = vmatpush.msrb.mxu0 %v119_v13  ;;  %v76_v50 = vld [vmem:[#allocation3 + $0x58] sm:$0xff]  ;;  %v147_v51 = vld [vmem:[#allocation3 + $0x290] sm:$0xff] }
  0x36   :  { %327 = vmatpush.msrb.mxu2 %v112_v14  ;;  %305 = vmatpush.msrb.mxu1 %v183_v15  ;;  %v144_v52 = vld [vmem:[#allocation3 + $0x278] sm:$0xff]  ;;  %v79_v53 = vld [vmem:[#allocation3 + $0x70] sm:$0xff]  ;;  %v196_v14 = vperm.slane %v605_v4, 1 }
  0x37   :  { %346 = vmatpush.msrb.mxu3 %v180_v16  ;;  %286 = vmatpush.msrb.mxu0 %v115_v17  ;;  %v72_v54 = vld [vmem:[#allocation3 + $0x38] sm:$0xff]  ;;  %v143_v55 = vld [vmem:[#allocation3 + $0x270] sm:$0xff] }
  0x38   :  { %328 = vmatpush.msrb.mxu2 %v108_v18  ;;  %306 = vmatpush.msrb.mxu1 %v179_v19  ;;  %v140_v56 = vld [vmem:[#allocation3 + $0x258] sm:$0xff]  ;;  %v75_v57 = vld [vmem:[#allocation3 + $0x50] sm:$0xff]  ;;  %v419_v19 = vld [vmem:[#allocation5 + $0x48] sm:$0xff] }
  0x39   :  { %347 = vmatpush.msrb.mxu3 %v176_v20  ;;  %287 = vmatpush.msrb.mxu0 %v111_v21  ;;  %v68_v58 = vld [vmem:[#allocation3 + $0x18] sm:$0xff]  ;;  %v139_v59 = vld [vmem:[#allocation3 + $0x250] sm:$0xff]  ;;  %v418_v21 = vld [vmem:[#allocation5 + $0x40] sm:$0xff] }
  0x3a   :  { %329 = vmatpush.msrb.mxu2 %v104_v22  ;;  %307 = vmatpush.msrb.mxu1 %v175_v23  ;;  %v136_v60 = vld [vmem:[#allocation3 + $0x238] sm:$0xff]  ;;  %v71_v61 = vld [vmem:[#allocation3 + $0x30] sm:$0xff] }
  0x3b   :  { %348 = vmatpush.msrb.mxu3 %v172_v24  ;;  %288 = vmatpush.msrb.mxu0 %v107_v25  ;;  %v135_v63 = vld [vmem:[#allocation3 + $0x230] sm:$0xff]  ;;  %v132_v0 = vld [vmem:[#allocation3 + $0x218] sm:$0xff] }
  0x3c   :  { %330 = vmatpush.msrb.mxu2 %v100_v26  ;;  %308 = vmatpush.msrb.mxu1 %v171_v27  ;;  %v67_v1 = vld [vmem:[#allocation3 + $0x10] sm:$0xff]  ;;  %v425_v5 = vld [vmem:[#allocation5 + $0x78] sm:$0xff] }
  0x3d   :  { %349 = vmatpush.msrb.mxu3 %v168_v28  ;;  %289 = vmatpush.msrb.mxu0 %v103_v29  ;;  %v131_v3 = vld [vmem:[#allocation3 + $0x210] sm:$0xff]  ;;  %v421_v12 = vld [vmem:[#allocation5 + $0x58] sm:$0xff]  ;;  %v415_v28 = vld [vmem:[#allocation5 + $0x28] sm:$0xff] }
  0x3e   :  { %331 = vmatpush.msrb.mxu2 %v96_v30  ;;  %309 = vmatpush.msrb.mxu1 %v167_v31  ;;  %v424_v7 = vld [vmem:[#allocation5 + $0x70] sm:$0xff]  ;;  %v417_v23 = vld [vmem:[#allocation5 + $0x38] sm:$0xff]  ;;  %v414_v29 = vld [vmem:[#allocation5 + $0x20] sm:$0xff] }
  0x3f   :  { %350 = vmatpush.msrb.mxu3 %v164_v32  ;;  %290 = vmatpush.msrb.mxu0 %v99_v33  ;;  %v420_v15 = vld [vmem:[#allocation5 + $0x50] sm:$0xff]  ;;  %v413_v30 = vld [vmem:[#allocation5 + $0x18] sm:$0xff] }
  0x40   :  { %332 = vmatpush.msrb.mxu2 %v92_v34  ;;  %310 = vmatpush.msrb.mxu1 %v163_v35  ;;  %v416_v26 = vld [vmem:[#allocation5 + $0x30] sm:$0xff]  ;;  %v411_v34 = vld [vmem:[#allocation5 + $0x8] sm:$0xff] }
  0x41   :  { %351 = vmatpush.msrb.mxu3 %v160_v36  ;;  %291 = vmatpush.msrb.mxu0 %v95_v37  ;;  %v412_v31 = vld [vmem:[#allocation5 + $0x10] sm:$0xff]  ;;  %v410_v36 = vld [vmem:[#allocation5] sm:$0xff] }
  0x42   :  { %333 = vmatpush.msrb.mxu2 %v88_v38  ;;  %311 = vmatpush.msrb.mxu1 %v159_v39 }
  0x43   :  { %352 = vmatpush.msrb.mxu3 %v156_v40  ;;  %292 = vmatpush.msrb.mxu0 %v91_v41 }
  0x44   :  { %334 = vmatpush.msrb.mxu2 %v84_v42  ;;  %312 = vmatpush.msrb.mxu1 %v155_v43  ;;  %v197_v42 = vperm.slane %v605_v4, 2 }
  0x45   :  { %353 = vmatpush.msrb.mxu3 %v152_v44  ;;  %293 = vmatpush.msrb.mxu0 %v87_v45  ;;  %v198_v44 = vperm.slane %v605_v4, 3 }
  0x46   :  { %335 = vmatpush.msrb.mxu2 %v80_v46  ;;  %313 = vmatpush.msrb.mxu1 %v151_v47 }
  0x47   :  { %354 = vmatpush.msrb.mxu3 %v148_v48  ;;  %294 = vmatpush.msrb.mxu0 %v83_v49 }
  0x48   :  { %336 = vmatpush.msrb.mxu2 %v76_v50  ;;  %314 = vmatpush.msrb.mxu1 %v147_v51 }
  0x49   :  { %355 = vmatpush.msrb.mxu3 %v144_v52  ;;  %295 = vmatpush.msrb.mxu0 %v79_v53 }
  0x4a   :  { %337 = vmatpush.msrb.mxu2 %v72_v54  ;;  %315 = vmatpush.msrb.mxu1 %v143_v55 }
  0x4b   :  { %356 = vmatpush.msrb.mxu3 %v140_v56  ;;  %296 = vmatpush.msrb.mxu0 %v75_v57 }
  0x4c   :  { %338 = vmatpush.msrb.mxu2 %v68_v58  ;;  %316 = vmatpush.msrb.mxu1 %v139_v59 }
  0x4d   :  { %357 = vmatpush.msrb.mxu3 %v136_v60  ;;  %339 = vmatmul.f32.vlgmr.msrb.gmra.mxu2 %v587_v62 }
  0x4e   :  { %297 = vmatpush.msrb.mxu0 %v71_v61  ;;  %317 = vmatpush.msrb.mxu1 %v135_v63 }
  0x4f   :  { %358 = vmatpush.msrb.mxu3 %v132_v0 }
  0x50   :  { %359 = vmatmul.f32.vlgmr.msrb.gmra.mxu3 %v592_v2  ;;  %298 = vmatpush.msrb.mxu0 %v67_v1 }
  0x51   :  { %299 = vmatmul.f32.vlgmr.msrb.gmra.mxu0 %v587_v62  ;;  %318 = vmatpush.msrb.mxu1 %v131_v3 }
  0x52   :  { %319 = vmatmul.f32.vlgmr.msrb.gmra.mxu1 %v592_v2  ;;  %430 = vmatpush.msra.mxu0 %v425_v5 }
  0x54   :  { %431 = vmatpush.msra.mxu0 %v424_v7 }
  0x56   :  { %432 = vmatpush.msra.mxu0 %v423_v8 }
  0x58   :  { %433 = vmatpush.msra.mxu0 %v422_v11  ;;  %v469_v11 = vld [vmem:[%s626_s5] ss:$0 sm:$0xff] }
  0x5a   :  { %434 = vmatpush.msra.mxu0 %v421_v12 }
  0x5c   :  { %435 = vmatpush.msra.mxu0 %v420_v15 }
  0x5e   :  { %436 = vmatpush.msra.mxu0 %v419_v19 }
  0x60   :  { %437 = vmatpush.msra.mxu0 %v418_v21 }
  0x62   :  { %438 = vmatpush.msra.mxu0 %v417_v23 }
  0x64   :  { %439 = vmatpush.msra.mxu0 %v416_v26 }
  0x66   :  { %440 = vmatpush.msra.mxu0 %v415_v28 }
  0x68   :  { %441 = vmatpush.msra.mxu0 %v414_v29 }
  0x6a   :  { %442 = vmatpush.msra.mxu0 %v413_v30 }
  0x6c   :  { %443 = vmatpush.msra.mxu0 %v412_v31 }
  0x6e   :  { %444 = vmatpush.msra.mxu0 %v411_v34 }
  0x70   :  { %445 = vmatpush.msra.mxu0 %v410_v36 }
  0xaa   :  { %v220_v9 = vpop.f32.mrf.mxu0 }
  0xab   :  { %v221_v10 = vadd.f32 %v220_v9, %v195_v6 }
  0xac   :  { %v240_v62 = vpop.f32.mrf.mxu1 }
  0xad   :  { %v241_v13 = vadd.f32 %v240_v62, %v221_v10 }
  0xaf   :  { %v461_v16 = vmul.f32 -1.442695, %v241_v13 }
  0xb0   :  { %v260_v17 = vpop.f32.mrf.mxu2 }
  0xb1   :  { %470 = vpow2.f32 %v461_v16  ;;  %v261_v18 = vadd.f32 %v260_v17, %v196_v14 }
  0xb3   :  { %v280_v20 = vpop.f32.mrf.mxu3 }
  0xb4   :  { %v281_v22 = vadd.f32 %v280_v20, %v261_v18 }
  0xb6   :  { %v462_v24 = vmul.f32 -1.442695, %v281_v22 }
  0xb7   :  { %v471_v25 = vpop.eup %470 }
  0xb8   :  { %v366_v27 = vadd.f32 1.0, %v471_v25  ;;  %472 = vpow2.f32 %v462_v24 }
  0xba   :  { %474 = vrcp.f32 %v366_v27  ;;  %vm372_vm0 = vweird.f32 %v366_v27  ;;  %v378_v47 = vand.u32 2147483648, %v366_v27  ;;  %v376_v50 = vand.u32 2147483647, %v366_v27 }
  0xbc   :  { %v379_v56 = vor.u32 1.1754944e-38, %v378_v47  ;;  %vm377_vm5 = vcmp.eq.f32.partialorder %v376_v50, 8.507059e+37 }
  0xbe   :  { %v473_v32 = vpop.eup %472 }
  0xbf   :  { %v385_v33 = vadd.f32 1.0, %v473_v32 }
  0xc0   :  { %v475_v35 = vpop.eup %474 }
  0xc1   :  { %476 = vrcp.f32 %v385_v33  ;;  %v368_v37 = vmul.f32 %v475_v35, %v366_v27  ;;  %vm373_vm1 = vweird.f32 %v475_v35  ;;  %vm391_vm3 = vweird.f32 %v385_v33 }
  0xc2   :  { %vm374_vm2 = vmor %vm372_vm0, %vm373_vm1  ;;  %v397_v59 = vand.u32 2147483648, %v385_v33  ;;  %v395_v63 = vand.u32 2147483647, %v385_v33 }
  0xc3   :  { %v369_v38 = vsub.f32 1.0, %v368_v37 }
  0xc4   :  { %v398_v3 = vor.u32 1.1754944e-38, %v397_v59  ;;  %vm396_vm7 = vcmp.eq.f32.partialorder %v395_v63, 8.507059e+37 }
  0xc5   :  { %v370_v41 = vmul.f32 %v475_v35, %v369_v38 }
  0xc7   :  { %v477_v39 = vpop.eup %476  ;;  %v371_v46 = vadd.f32 %v475_v35, %v370_v41 }
  0xc8   :  { %v387_v40 = vmul.f32 %v477_v39, %v385_v33  ;;  %vm392_vm4 = vweird.f32 %v477_v39 }
  0xc9   :  { %v375_v54 = vsel %vm374_vm2, %v475_v35, %v371_v46  ;;  %vm393_vm6 = vmor %vm391_vm3, %vm392_vm4 }
  0xca   :  { %v388_v43 = vsub.f32 1.0, %v387_v40  ;;  %v380_v60 = vsel %vm377_vm5, %v379_v56, %v375_v54 }
  0xcc   :  { %v389_v51 = vmul.f32 %v477_v39, %v388_v43 }
  0xce   :  { %v300_v45 = vpop.f32.mrf.mxu0  ;;  %v390_v61 = vadd.f32 %v477_v39, %v389_v51 }
  0xcf   :  { %v301_v49 = vadd.f32 %v300_v45, %v197_v42  ;;  %v320_v53 = vpop.f32.mrf.mxu1 }
  0xd0   :  { %v340_v48 = vpop.f32.mrf.mxu2  ;;  %v394_v4 = vsel %vm393_vm6, %v477_v39, %v390_v61 }
  0xd1   :  { %v341_v52 = vadd.f32 %v340_v48, %v198_v44  ;;  %v321_v58 = vadd.f32 %v320_v53, %v301_v49  ;;  %v399_v5 = vsel %vm396_vm7, %v398_v3, %v394_v4 }
  0xd2   :  { %v404_v6 = vsub.f32 1.0, %v399_v5  ;;  %v406_v9 = vmul.f32 %v399_v5, %v592_v2 }
  0xd3   :  { %v360_v55 = vpop.f32.mrf.mxu3 }
  0xd4   :  { %v361_v57 = vadd.f32 %v360_v55, %v341_v52 }
  0xd6   :  { %v401_v0 = vmul.f32 %v380_v60, %v361_v57 }
  0xd8   :  { %v402_v1 = vadd.f32 %v401_v0, %v321_v58 }
  0xda   :  { %478 = vtanh.f32 %v402_v1 }
  0xe0   :  { %v479_v7 = vpop.eup %478 }
  0xe1   :  { %v405_v8 = vmul.f32 %v479_v7, %v404_v6 }
  0xe3   :  { %v407_v10 = vadd.f32 %v406_v9, %v405_v8 }
  0xe5   :  { %409 = vst [vmem:[%s628_s7] sm:$0xff] %v407_v10  ;;  %446 = vmatmul.f32.vlgmr.msra.gmra.mxu0 %v407_v10 }
 0x162   :  { %v447_v62 = vpop.f32.mrf.mxu0 }
 0x163   :  { %v448_v12 = vadd.f32 %v469_v11, %v447_v62 }
 0x165   :  { %450 = vst [vmem:[%s627_s6] sm:$0xff] %v448_v12 }
 0x166   :  { %459 = vsyncpa [#allocation4], 1 }
 0x167   :  { %460 = vsyncpa [#allocation6], 1 }

</bundles_post_ra>
